<compile_context>
chip_gen: v7x
topology: tpu7x:2x2x1
jax: 0.10.0
libtpu: 0.0.40
codegen_flags: <defaults>
</compile_context>

<pallas_src>
import functools

import jax
import jax.numpy as jnp
from jax.experimental import pallas as pl
from jax.experimental.pallas import tpu as pltpu


# --------------------------------------------------------------------------- #
# pltpu.roll convention probe (sign convention is resolved empirically once).
# --------------------------------------------------------------------------- #

_ROLL_MATCHES_NUMPY = True  # overwritten in __main__ by _probe_roll_convention()


def _probe_roll_convention():
    """Returns True iff pltpu.roll follows jnp.roll's sign convention."""
    def kern(x_ref, o_ref):
        o_ref[...] = pltpu.roll(x_ref[...], 1, axis=0)

    x = jax.lax.broadcasted_iota(jnp.float32, (32, 128), 0)
    y = pl.pallas_call(
        kern, out_shape=jax.ShapeDtypeStruct((32, 128), jnp.float32))(x)
    return bool(jax.device_get(y)[0, 0] == 31.0)


def _shift_rows(x, s):
    """y[p, :] = x[p + s, :] (rows wrap around; callers mask wrapped rows)."""
    n = x.shape[0]
    amt = (-s) % n if _ROLL_MATCHES_NUMPY else s % n
    return pltpu.roll(x, amt, axis=0)


# --------------------------------------------------------------------------- #
# In-kernel building blocks (operate on VMEM-resident values).
# --------------------------------------------------------------------------- #

def _conv3x3(x, w9, *, H, W, relu=True):
    """3x3 / stride-1 / pad-1 conv of a whole batch held as a flat value.

    x  : (N*H*W, Cin) f32 value; rows are NHWC pixels in row-major order.
    w9 : (9*Cin, Cout) bf16 value; HWIO weights reshaped tap-major.
    One im2col matmul with K = 9*Cin (review: replaces 9 accumulated K=Cin dots).
    """
    M, cin = x.shape
    HW = H * W
    row = jax.lax.broadcasted_iota(jnp.int32, (M, cin), 0)
    col = row % W          # x coordinate within an image row
    pos = row % HW         # flat position within one image (no cross-image leak)

    taps = []
    for dy in (-1, 0, 1):
        for dx in (-1, 0, 1):
            s = dy * W + dx
            t = x if s == 0 else _shift_rows(x, s)   # XLU roll: cheap, alignment-free
            conds = []
            if dy == -1:
                conds.append(pos >= W)
            elif dy == 1:
                conds.append(pos < HW - W)
            if dx == -1:
                conds.append(col >= 1)
            elif dx == 1:
                conds.append(col < W - 1)
            if conds:
                m = functools.reduce(jnp.logical_and, conds)
                t = jnp.where(m, t, 0.0)             # zero padding semantics
            taps.append(t)

    # im2col patch matrix, bf16 operands for the MXU, f32 accumulation.
    patches = jnp.concatenate(taps, axis=-1).astype(jnp.bfloat16)   # (M, 9*Cin)
    out = jnp.dot(patches, w9, preferred_element_type=jnp.float32)  # (M, Cout)
    if relu:
        out = jnp.maximum(out, 0.0)
    return out


def _batchnorm(x, eps=1e-5):
    """Training-mode BatchNorm2d (weight=1, bias=0) over a (N*H*W, C) value."""
    m = x.shape[0]
    mean = jnp.sum(x, axis=0, keepdims=True) * (1.0 / m)
    d = x - mean
    var = jnp.sum(d * d, axis=0, keepdims=True) * (1.0 / m)   # biased variance
    return d * jax.lax.rsqrt(var + eps)


# --------------------------------------------------------------------------- #
# Fused Pallas kernels (whole batch per invocation, everything VMEM resident).
# --------------------------------------------------------------------------- #

def _basic_block_kernel(x_ref, w1_ref, w2_ref, o_ref, *, H, W):
    # conv1 -> ReLU -> BN -> conv2 -> ReLU -> BN, no HBM traffic in between.
    h = _conv3x3(x_ref[...], w1_ref[...], H=H, W=W, relu=True)
    h = _batchnorm(h)
    h = _conv3x3(h, w2_ref[...], H=H, W=W, relu=True)
    h = _batchnorm(h)
    o_ref[...] = h


def _decode_block_kernel(u_ref, skip_ref, wup_ref, w1_ref, w2_ref, o_ref, *, H, W):
    # ReLU(conv_after_up(u)); torch.cat([skip, .], dim=channels) folded into the
    # next conv via a lane concat in registers; then the BasicBlock(2c -> c).
    y = _conv3x3(u_ref[...], wup_ref[...], H=H, W=W, relu=True)
    z = jnp.concatenate([skip_ref[...], y], axis=-1)      # == torch.cat([tmp, x], 1)
    z = _conv3x3(z, w1_ref[...], H=H, W=W, relu=True)
    z = _batchnorm(z)
    z = _conv3x3(z, w2_ref[...], H=H, W=W, relu=True)
    z = _batchnorm(z)
    o_ref[...] = z


# --------------------------------------------------------------------------- #
# pallas_call wrappers.
# --------------------------------------------------------------------------- #

def _vmem_spec():
    return pl.BlockSpec(memory_space=pltpu.MemorySpace.VMEM)


def _w9(w):
    """(3,3,Cin,Cout) HWIO f32 -> (9*Cin, Cout) bf16, tap-major (matches _conv3x3)."""
    kh, kw, cin, cout = w.shape
    return w.reshape(kh * kw * cin, cout).astype(jnp.bfloat16)


def basic_block(x, w1, w2):
    """Fused BasicBlock.  x: (N,H,W,Cin) f32; w1: (3,3,Cin,Cm); w2: (3,3,Cm,Cm)."""
    N, H, W, _ = x.shape
    cm = w1.shape[-1]
    M = N * H * W
    out = pl.pallas_call(
        functools.partial(_basic_block_kernel, H=H, W=W),
        out_shape=jax.ShapeDtypeStruct((M, cm), jnp.float32),
        in_specs=[_vmem_spec(), _vmem_spec(), _vmem_spec()],
        out_specs=_vmem_spec(),
    )(x.reshape(M, -1), _w9(w1), _w9(w2))
    return out.reshape(N, H, W, cm)


def decode_block(u, skip, w_up, w1, w2):
    """Fused ReLU(conv_after_up(u)) + concat([skip, .]) + BasicBlock(2c -> c)."""
    N, H, W, _ = u.shape
    c = skip.shape[-1]
    M = N * H * W
    out = pl.pallas_call(
        functools.partial(_decode_block_kernel, H=H, W=W),
        out_shape=jax.ShapeDtypeStruct((M, c), jnp.float32),
        in_specs=[_vmem_spec()] * 5,
        out_specs=_vmem_spec(),
    )(u.reshape(M, -1), skip.reshape(M, -1), _w9(w_up), _w9(w1), _w9(w2))
    return out.reshape(N, H, W, c)


# --------------------------------------------------------------------------- #
# Tiny plain-JAX glue (pure data movement at these sizes).
# --------------------------------------------------------------------------- #

def max_pool2(x):                              # nn.MaxPool2d(2, 2)
    n, h, w, c = x.shape
    return jnp.max(x.reshape(n, h // 2, 2, w // 2, 2, c), axis=(2, 4))


def upsample_nearest2(x):                      # F.interpolate(scale_factor=2)
    return jnp.repeat(jnp.repeat(x, 2, axis=1), 2, axis=2)


# --------------------------------------------------------------------------- #
# Parameters / forward.
# --------------------------------------------------------------------------- #

def _conv_w(key, cin, cout):
    fan_in = cin * 9
    return jax.random.normal(key, (3, 3, cin, cout), jnp.float32) / jnp.sqrt(
        jnp.float32(fan_in))


def init_ublock(key, c, depth):
    k1, k2, k3, k4, k5, k6 = jax.random.split(key, 6)
    p = {
        "cb1_w1": _conv_w(k1, c, 2 * c),
        "cb1_w2": _conv_w(k2, 2 * c, 2 * c),
        "up_w": _conv_w(k3, 2 * c, c),
        "cb2_w1": _conv_w(k4, 2 * c, c),
        "cb2_w2": _conv_w(k5, c, c),
    }
    if depth > 1:
        p["mid"] = init_ublock(k6, 2 * c, depth - 1)
    return p


def ublock_forward(params, x):                 # x: NHWC
    skip = x
    h = max_pool2(x)
    h = basic_block(h, params["cb1_w1"], params["cb1_w2"])
    if "mid" in params:
        h = ublock_forward(params["mid"], h)
    u = upsample_nearest2(h)
    return decode_block(u, skip, params["up_w"], params["cb2_w1"], params["cb2_w2"])


def ublock_apply_nchw(params, x_nchw):
    x = jnp.transpose(x_nchw, (0, 2, 3, 1))    # NCHW -> NHWC
    y = ublock_forward(params, x)
    return jnp.transpose(y, (0, 3, 1, 2))      # NHWC -> NCHW


# --------------------------------------------------------------------------- #
# Pure-JAX (XLA) reference of the same module, for a numerical cross-check.
# --------------------------------------------------------------------------- #

def _ref_conv3x3(x, w):
    # Match the kernel's bf16 operand rounding, accumulate in f32.
    xb = x.astype(jnp.bfloat16).astype(jnp.float32)
    wb = w.astype(jnp.bfloat16).astype(jnp.float32)
    return jax.lax.conv_general_dilated(
        xb, wb, window_strides=(1, 1), padding="SAME",
        dimension_numbers=("NHWC", "HWIO", "NHWC"),
        precision=jax.lax.Precision.HIGHEST)


def _ref_bn(x, eps=1e-5):
    mean = jnp.mean(x, axis=(0, 1, 2), keepdims=True)
    var = jnp.mean(jnp.square(x - mean), axis=(0, 1, 2), keepdims=True)
    return (x - mean) * jax.lax.rsqrt(var + eps)


def _ref_basic_block(x, w1, w2):
    h = _ref_bn(jnp.maximum(_ref_conv3x3(x, w1), 0.0))
    return _ref_bn(jnp.maximum(_ref_conv3x3(h, w2), 0.0))


def _ref_ublock(params, x):
    skip = x
    h = max_pool2(x)
    h = _ref_basic_block(h, params["cb1_w1"], params["cb1_w2"])
    if "mid" in params:
        h = _ref_ublock(params["mid"], h)
    u = upsample_nearest2(h)
    y = jnp.maximum(_ref_conv3x3(u, params["up_w"]), 0.0)
    z = jnp.concatenate([skip, y], axis=-1)
    return _ref_basic_block(z, params["cb2_w1"], params["cb2_w2"])


# --------------------------------------------------------------------------- #
# main
# --------------------------------------------------------------------------- #

if __name__ == "__main__":
    _ROLL_MATCHES_NUMPY = _probe_roll_convention()

    key = jax.random.PRNGKey(0)
    kx, kp = jax.random.split(key)

    batch, inplanes, spatial, depth = 2, 4, 16, 2
    x = jax.random.normal(kx, (batch, inplanes, spatial, spatial), jnp.float32)  # NCHW
    params = init_ublock(kp, inplanes, depth)

    fwd = jax.jit(functools.partial(ublock_apply_nchw, params))
    y = jax.block_until_ready(fwd(x))

    assert y.shape == (batch, inplanes, spatial, spatial), y.shape
    assert y.dtype == jnp.float32
    assert bool(jnp.all(jnp.isfinite(y)))

    # Numerical cross-check against the XLA reference (loose tolerance covers
    # MXU-vs-XLA accumulation/rounding differences; structural bugs give O(1)
    # errors on the BatchNorm-normalized outputs).
    x_nhwc = jnp.transpose(x, (0, 2, 3, 1))
    y_ref = jnp.transpose(
        jax.jit(functools.partial(_ref_ublock, params))(x_nhwc), (0, 3, 1, 2))
    max_err = float(jnp.max(jnp.abs(y - y_ref)))
    assert max_err < 1e-1, f"mismatch vs reference: max|diff|={max_err}"

    print("KERNEL_OK")
</pallas_src>

<mosaic_0001>
module attributes {stable_mosaic.version = 11 : i64} {
  func.func @kern(%arg0: memref<32x128xf32, #tpu.memory_space<vmem>>, %arg1: memref<32x128xf32, #tpu.memory_space<vmem>>) attributes {dimension_semantics = [], scalar_prefetch = 0 : i64, scratch_operands = 0 : i64, tpu.core_type = #tpu.core_type<tc>} {
    %c0 = arith.constant 0 : index
    %c0_0 = arith.constant 0 : index
    %0 = vector.load %arg0[%c0, %c0_0] : memref<32x128xf32, #tpu.memory_space<vmem>>, vector<32x128xf32>
    %c1_i32 = arith.constant 1 : i32
    %1 = tpu.dynamic_rotate %0 by %c1_i32 dim 0 : vector<32x128xf32>, i32 -> vector<32x128xf32>
    %c0_1 = arith.constant 0 : index
    %c0_2 = arith.constant 0 : index
    %2 = vector.load %arg1[%c0_1, %c0_2] : memref<32x128xf32, #tpu.memory_space<vmem>>, vector<32x128xf32>
    tpu.vector_store %arg1[%c0_1, %c0_2], %1 {strides = array<i32>} : memref<32x128xf32, #tpu.memory_space<vmem>>, vector<32x128xf32>,
    return
  }
}

</mosaic_0001>

<bundles_post_ra>
// kernel: tpu_custom_call.1
= control target key start
LH: loop header
LB: loop body
LE: loop exit
PB: predicated region body
PF: predicated region fallthrough
CT: control target
= control target key end

     0   :  { %6 = vsyncpa [#allocation3], 0  ;;  %s155_s0 = inlined_call_operand.hbm [shape: f32[32,128], index: 0, kind: input, shape index: {}]   ;;  %s156_s1 = inlined_call_operand.hbm [shape: f32[32,128], index: 1, kind: output, shape index: {}]  }
   0x1   :  { %7 = vsyncpa [#allocation4], 0  ;;  %s111_s6 = smov [#allocation2]   ;;  %s63_s10 = scalar_lea.hbm %s155_s0, 512 }
   0x2   :  { %s13_s7 = sshll.u32 %s111_s6, 4  ;;  %p64_p0 = scmp.ne.s32.totalorder %s155_s0, %s63_s10  ;;  %s14_s7 = int_to_ptr.vmem [resolvable:$true] %s13_s7 }
   0x3   :  { %p67_p1 = scmp.lt.u32.totalorder %s63_s10, %s155_s0 }
   0x5   :  { %p69_p2 = pnand %p67_p1, %p64_p0 }
   0x7   :  { %72 = shalt.err (!%p69_p2)
}
   0x8   :  { %s73_s15 = scalar_lea.vmem %s14_s7, 512  ;;  %p78_p4 = scmp.lt.s32.totalorder %s14_s7, %s14_s7 }
   0x9   :  { %p74_p3 = scmp.ne.s32.totalorder %s14_s7, %s73_s15  ;;  %p79_p5 = scmp.lt.s32.totalorder %s73_s15, %s73_s15 }
   0xb   :  { %p80_p6 = por %p79_p5, %p78_p4 }
   0xd   :  { %p81_p7 = pnand %p80_p6, %p74_p3 }
   0xf   :  { %84 = shalt.err (!%p81_p7)
}
  0x10   :  { %s112_s16 = smov 128   ;;  %s113_s17 = smov 8  }
  0x11   :  { %19 = dma.hbm_to_vmem [thread:$0]  %s155_s0, 512, %s14_s7, [#allocation3], %s112_s16, %s112_s16, %s113_s17  }
  0x12   :  { %107 = dma.done.wait [#allocation3], 512  }
  0x13   :  { %108 = vsyncadd [#allocation3], 4294966784  ;;  %v31_v0 = vlaneseq  ;;  %v23_v2 = vld [vmem:[#allocation2] sm:$0xff]  ;;  %v26_v3 = vld [vmem:[#allocation2 + $0x18] sm:$0xff]  ;;  %s114_s20 = smov [#allocation5]  }
  0x14   :  { %v24_v4 = vld [vmem:[#allocation2 + $0x8] sm:$0xff]  ;;  %s47_s21 = sshll.u32 %s114_s20, 4  ;;  %v27_v5 = vrot.slane %v23_v2, 7  ;;  %v30_v6 = vrot.slane %v26_v3, 7  ;;  %v25_v8 = vld [vmem:[#allocation2 + $0x10] sm:$0xff]  ;;  %s48_s21 = int_to_ptr.vmem [resolvable:$true] %s47_s21 }
  0x15   :  { %v32_v1 = vshrl.u32 %v31_v0, 7  ;;  %v28_v7 = vrot.slane %v24_v4, 7  ;;  %v29_v9 = vrot.slane %v25_v8, 7  ;;  %s85_s0 = scalar_lea.vmem %s48_s21, 512  ;;  %p90_p9 = scmp.lt.s32.totalorder %s48_s21, %s48_s21 }
  0x16   :  { %p86_p8 = scmp.ne.s32.totalorder %s48_s21, %s85_s0  ;;  %p91_p10 = scmp.lt.s32.totalorder %s85_s0, %s85_s0 }
  0x17   :  { %vm33_vm0 = vcmp.lt.s32.totalorder %v32_v1, 1 }
  0x18   :  { %v37_v10 = vsel %vm33_vm0, %v30_v6, %v27_v5  ;;  %v36_v11 = vsel %vm33_vm0, %v27_v5, %v28_v7  ;;  %v35_v12 = vsel %vm33_vm0, %v28_v7, %v29_v9  ;;  %v34_v13 = vsel %vm33_vm0, %v29_v9, %v30_v6  ;;  %p92_p11 = por %p91_p10, %p90_p9 }
  0x19   :  { %38 = vst [vmem:[#allocation5] sm:$0xff] %v37_v10  ;;  %39 = vst [vmem:[#allocation5 + $0x8] sm:$0xff] %v36_v11 }
  0x1a   :  { %40 = vst [vmem:[#allocation5 + $0x10] sm:$0xff] %v35_v12  ;;  %41 = vst [vmem:[#allocation5 + $0x18] sm:$0xff] %v34_v13  ;;  %p93_p12 = pnand %p92_p11, %p86_p8 }
  0x1c   :  { %96 = shalt.err (!%p93_p12)
}
  0x1d   :  { %s97_s24 = scalar_lea.hbm %s156_s1, 512 }
  0x1e   :  { %p98_p13 = scmp.ne.s32.totalorder %s156_s1, %s97_s24  ;;  %p101_p0 = scmp.lt.u32.totalorder %s97_s24, %s156_s1 }
  0x20   :  { %p103_p1 = pnand %p101_p0, %p98_p13 }
  0x22   :  { %106 = shalt.err (!%p103_p1)
}
  0x23   :  { %53 = dma.vmem_to_hbm [thread:$0]  %s48_s21, 512, %s156_s1, [#allocation4], %s112_s16, %s112_s16, %s113_s17  }
  0x24   :  { %109 = dma.done.wait [#allocation4], 512  }
  0x25   :  { %110 = vsyncadd [#allocation4], 4294966784 }
  0x26   :  { %57 = vsyncpa [#allocation3], 1 }
  0x27   :  { %58 = vsyncpa [#allocation4], 1 }

</bundles_post_ra>
